<compile_context>
chip_gen: v5e
topology: v5e:2x2
jax: 0.10.0
libtpu: 0.0.40
codegen_flags: <defaults>
</compile_context>

<pallas_src>
import jax
import jax.numpy as jnp
from jax.experimental import pallas as pl
from jax.experimental.pallas import tpu as pltpu


def linear_kernel(x_ref, w_ref, b_ref, o_ref):
    # x_ref: (TM, K) f32, w_ref: (K, N) bf16, b_ref: (1, N) f32, o_ref: (TM, N) f32
    x_bf16 = x_ref[...].astype(jnp.bfloat16)  # cheap VPU cast, bf16 MXU path
    acc = jnp.dot(x_bf16, w_ref[...], preferred_element_type=jnp.float32)
    o_ref[...] = (acc + b_ref[...]).astype(o_ref.dtype)


def linear_pallas(x, w_in_out_bf16, bias, *, row_block=192):
    """x: [B, S, K] f32; w_in_out_bf16: [K, N] bf16 (transposed at setup);
    bias: [N] f32.  Returns [B, S, N] f32."""
    B, S, K = x.shape
    Kw, N = w_in_out_bf16.shape
    assert K == Kw
    M = B * S

    # Fall back to a single step if the row blocking doesn't divide M.
    if M % row_block != 0 or row_block % 8 != 0:
        row_block = M
    assert N % 128 == 0 and K % 128 == 0

    x2d = x.reshape(M, K)
    b2d = bias.reshape(1, N).astype(jnp.float32)

    grid = (M // row_block,)

    out = pl.pallas_call(
        linear_kernel,
        out_shape=jax.ShapeDtypeStruct((M, N), x.dtype),
        grid_spec=pltpu.PrefetchScalarGridSpec(
            num_scalar_prefetch=0,
            grid=grid,
            in_specs=[
                pl.BlockSpec((row_block, K), lambda i: (i, 0)),   # x rows
                pl.BlockSpec((K, N), lambda i: (0, 0)),           # weight (grid-invariant)
                pl.BlockSpec((1, N), lambda i: (0, 0)),           # bias   (grid-invariant)
            ],
            out_specs=pl.BlockSpec((row_block, N), lambda i: (i, 0)),
        ),
        compiler_params=pltpu.CompilerParams(
            dimension_semantics=("parallel",),  # shard rows across TCs on v7x
        ),
        cost_estimate=pl.CostEstimate(
            flops=2 * M * K * N,
            transcendentals=0,
            bytes_accessed=(M * K * 4        # x (f32 in)
                            + K * N * 2      # weight (bf16)
                            + N * 4          # bias (f32)
                            + M * N * 4),    # out (f32)
        ),
    )(x2d, w_in_out_bf16, b2d)

    return out.reshape(B, S, N)


if __name__ == "__main__":
    key = jax.random.PRNGKey(0)
    kx, kw, kb = jax.random.split(key, 3)

    B, S, H_IN, H_OUT = 1, 384, 256, 256

    x71 = jax.random.normal(kx, (B, S, H_IN), dtype=jnp.float32)
    # Deterministic parameter init (mimics nn.Linear's uniform(-1/sqrt(fan_in), +))
    bound = 1.0 / (H_IN ** 0.5)
    weight = jax.random.uniform(kw, (H_OUT, H_IN), dtype=jnp.float32,
                                minval=-bound, maxval=bound)
    bias = jax.random.uniform(kb, (H_OUT,), dtype=jnp.float32,
                              minval=-bound, maxval=bound)

    # One-time parameter setup: [out, in] -> [in, out] transpose AND bf16 cast,
    # so the per-call path never emits a transpose or a weight cast.
    w_in_out_bf16 = jnp.asarray(weight.T, dtype=jnp.bfloat16)

    out = linear_pallas(x71, w_in_out_bf16, bias)
    jax.block_until_ready(out)

    # Reference check against plain JAX (PyTorch semantics: x @ W^T + b).
    # Tolerance loosened for bf16 operands (f32 accumulation keeps error small).
    ref = jnp.einsum("bsk,nk->bsn", x71, weight) + bias
    assert out.shape == (B, S, H_OUT)
    assert jnp.allclose(out, ref, atol=3e-2, rtol=3e-2)

    print("KERNEL_OK")
</pallas_src>

<mosaic_0001>
module attributes {stable_mosaic.version = 11 : i64} {
  func.func @linear_kernel(%arg0: i32, %arg1: memref<192x256xf32, #tpu.memory_space<vmem>>, %arg2: memref<256x256xbf16, #tpu.memory_space<vmem>>, %arg3: memref<1x256xf32, #tpu.memory_space<vmem>>, %arg4: memref<192x256xf32, #tpu.memory_space<vmem>>) attributes {dimension_semantics = [#tpu.dimension_semantics<parallel>], iteration_bounds = array<i64: 2>, scalar_prefetch = 0 : i64, scratch_operands = 0 : i64, tpu.core_type = #tpu.core_type<tc>, window_params = [{transform_indices = @transform_0, window_bounds = array<i64: 192, 256>}, {pipeline_mode = #tpu.pipeline_mode<synchronous>, transform_indices = @transform_1, window_bounds = array<i64: 256, 256>}, {pipeline_mode = #tpu.pipeline_mode<synchronous>, transform_indices = @transform_2, window_bounds = array<i64: 1, 256>}, {transform_indices = @transform_3, window_bounds = array<i64: 192, 256>}]} {
    %c0 = arith.constant 0 : index
    %c0_0 = arith.constant 0 : index
    %0 = vector.load %arg1[%c0, %c0_0] : memref<192x256xf32, #tpu.memory_space<vmem>>, vector<192x256xf32>
    %1 = arith.truncf %0 : vector<192x256xf32> to vector<192x256xbf16>
    %c0_1 = arith.constant 0 : index
    %c0_2 = arith.constant 0 : index
    %2 = vector.load %arg2[%c0_1, %c0_2] : memref<256x256xbf16, #tpu.memory_space<vmem>>, vector<256x256xbf16>
    %cst = arith.constant dense<0.000000e+00> : vector<192x256xf32>
    %3 = tpu.matmul %1, %2, %cst {dimension_numbers = #tpu.dot_dimension_numbers<[1], [0], [0], [1], [0, 0, 1, 1], [], []>} : vector<192x256xbf16>, vector<256x256xbf16>, vector<192x256xf32> -> vector<192x256xf32>
    %c0_3 = arith.constant 0 : index
    %c0_4 = arith.constant 0 : index
    %4 = vector.load %arg3[%c0_3, %c0_4] : memref<1x256xf32, #tpu.memory_space<vmem>>, vector<1x256xf32>
    %5 = vector.broadcast %4 : vector<1x256xf32> to vector<192x256xf32>
    %6 = arith.addf %3, %5 : vector<192x256xf32>
    %c0_5 = arith.constant 0 : index
    %c0_6 = arith.constant 0 : index
    %7 = vector.load %arg4[%c0_5, %c0_6] : memref<192x256xf32, #tpu.memory_space<vmem>>, vector<192x256xf32>
    tpu.vector_store %arg4[%c0_5, %c0_6], %6 {strides = array<i32>} : memref<192x256xf32, #tpu.memory_space<vmem>>, vector<192x256xf32>,
    return
  }
  func.func @transform_0(%arg0: i32) -> (i32, i32) {
    %c0_i32 = arith.constant 0 : i32
    %c0_i32_0 = arith.constant 0 : i32
    return %arg0, %c0_i32 : i32, i32
  }
  func.func @transform_1(%arg0: i32) -> (i32, i32) {
    %c0_i32 = arith.constant 0 : i32
    %c0_i32_0 = arith.constant 0 : i32
    %c0_i32_1 = arith.constant 0 : i32
    return %c0_i32, %c0_i32_0 : i32, i32
  }
  func.func @transform_2(%arg0: i32) -> (i32, i32) {
    %c0_i32 = arith.constant 0 : i32
    %c0_i32_0 = arith.constant 0 : i32
    %c0_i32_1 = arith.constant 0 : i32
    return %c0_i32, %c0_i32_0 : i32, i32
  }
  func.func @transform_3(%arg0: i32) -> (i32, i32) {
    %c0_i32 = arith.constant 0 : i32
    %c0_i32_0 = arith.constant 0 : i32
    return %arg0, %c0_i32 : i32, i32
  }
}

</mosaic_0001>

<bundles_post_ra>
// kernel: tpu_custom_call.1
= control target key start
LH: loop header
LB: loop body
LE: loop exit
PB: predicated region body
PF: predicated region fallthrough
CT: control target
= control target key end

     0   :  { %8 = vsyncpa [#allocation3], 0  ;;  %s1671_s0 = inlined_call_operand.hbm [shape: f32[384,256], index: 0, kind: input, shape index: {}]   ;;  %s1672_s1 = inlined_call_operand.hbm [shape: bf16[256,256], index: 1, kind: input, shape index: {}]   ;;  %s1673_s2 = inlined_call_operand.hbm [shape: f32[1,256], index: 2, kind: input, shape index: {}]   ;;  %s1674_s3 = inlined_call_operand.hbm [shape: f32[384,256], index: 3, kind: output, shape index: {}]  }
   0x1   :  { %10 = vsyncpa [#allocation3 + $0x1], 0 }
   0x2   :  { %11 = vsyncpa [#allocation6], 0 }
   0x3   :  { %12 = vsyncpa [#allocation4], 0 }
   0x4   :  { %14 = vsyncpa [#allocation4 + $0x1], 0  ;;  %s1373_s12 = smov 0   ;;  %s1375_s13 = smov 0  }
   0x5   :  { %s1377_s14 = smov 0   ;;  %s1379_s15 = smov 0  }
   0x6 LB: > { %s1394_s16 = sadd.s32 4294967295, %s1343_s15   ;;  %s928_s17 = sadd.s32 4294967294, %s1343_s15   ;;  %s1343_s15 = sphi %s1379_s15, %s1684_s15   ;;  %s1339_s14 = sphi %s1377_s14, %s1683_s14   ;;  %s1335_s13 = sphi %s1375_s13, %s1682_s13   ;;  %s1331_s12 = sphi %s1373_s12, %s1681_s12  }
   0x7   : > { %p40_p0 = scmp.ne.s32.totalorder %s1335_s13, %s1331_s12  ;;  %p41_p1 = scmp.eq.s32.totalorder %s1394_s16, 0 }
   0x8   : > { %p106_p2 = scmp.eq.s32.totalorder %s1394_s16, 1  ;;  %p112_p3 = scmp.eq.s32.totalorder %s928_s17, 1 }
   0x9   : > { %p1403_p4 = por %p41_p1, %p40_p0  ;;  %p929_p5 = scmp.ge.s32.totalorder %s1343_s15, 1 }
   0xa   : > { %p1408_p6 = por %p112_p3, %p40_p0  ;;  %p119_p7 = scmp.lt.s32.totalorder %s1343_s15, 3 }
   0xb   : > { %s130_s22 = sshll.u32 %s1672_s1, 4  ;;  %s1345_s24 = smov [#allocation5]   ;;  %s131_s22 = int_to_ptr.hbm [resolvable:$true] %s130_s22 }
   0xc   : > { %p1416_p8 = pnand %p929_p5, %p119_p7  ;;  %s132_s25 = sshll.u32 %s1345_s24, 4  ;;  %s133_s25 = int_to_ptr.vmem [resolvable:$true] %s132_s25 }
   0xd   : > { %s145_s28 = sshll.u32 %s1673_s2, 4  ;;  %s1346_s29 = smov 128   ;;  %s146_s28 = int_to_ptr.hbm [resolvable:$true] %s145_s28 }
   0xe   : > { %p1122_p9 = pneg %p1416_p8  ;;  %s1347_s30 = smov 8  }
   0xf   : > { %s1348_s4 = smov [#allocation7]   ;;  %s1429_s6 = sadd.s32 1, %s1343_s15  }
  0x10   : > { %p1123_p10 = pnand %p1122_p9, %p41_p1  ;;  %s147_s5 = sshll.u32 %s1348_s4, 4  ;;  %s148_s5 = int_to_ptr.vmem [resolvable:$true] %s147_s5 }
  0x11   : > { %s27_s7 = sadd.s32 1, %s1339_s14  ;;  %s24_s8 = ssub.s32 %s1343_s15, %s1429_s6 }
  0x12   : > { %1125 = dma.hbm_to_vmem [thread:$0]  (!%p1123_p10), %s131_s22, 4096, %s133_s25, [#allocation6], %s1346_s29, %s1346_s29, %s1347_s30  }
  0x13   : > { %1128 = dma.hbm_to_vmem [thread:$0]  (!%p1123_p10), %s146_s28, 32, %s148_s5, [#allocation6]  }
  0x14   : > { %p34_p12 = scmp.ne.s32.totalorder %s1339_s14, %s1335_s13  ;;  %p25_p13 = scmp.eq.s32.totalorder %s24_s8, 0 }
  0x15   : > { %p35_p0 = scmp.eq.s32.totalorder %s1343_s15, 0  ;;  %p1139_p5 = scmp.lt.s32.totalorder %s1343_s15, 2 }
  0x16   : > { %p1439_p3 = por %p106_p2, %p34_p12  ;;  %s158_s11 = sand.u32 1, %s1339_s14  }
  0x17   : > { %s1445_s10 = scalar_select %p25_p13, %s1339_s14, %s27_s7  }
  0x18   : > { %p36_p7 = por %p35_p0, %p34_p12  ;;  %s1108_s17 = smul.u32 384, %s158_s11 }
  0x19   : > { %s1106_s20 = smul.u32 384, %s1343_s15  ;;  %s159_s29 = scalar_lea.sflag [#allocation3], %s158_s11 }
  0x1a   : > { %p1449_p9 = pnand %p1139_p5, %p36_p7  ;;  %s162_s26 = scalar_lea.vmem [#allocation2], %s1108_s17 }
  0x1b   : > { %s168_s25 = scalar_lea.hbm %s1671_s0, %s1106_s20  ;;  %s171_s27 = sshll.u32 %s162_s26, 4  ;;  %s172_s27 = int_to_ptr.vmem [resolvable:$true] %s171_s27 }
  0x1c   : > { %s169_s28 = sshll.u32 %s168_s25, 4  ;;  %p1247_p10 = pneg %p1449_p9  ;;  %s170_s28 = int_to_ptr.hbm [resolvable:$true] %s169_s28 }
  0x1d   : > { %s1243_s30 = sshra.s32 %s170_s28, 4  ;;  %s1250_s8 = scalar_lea.hbm %s1671_s0, 768  ;;  %s1244_s30 = int_to_ptr.hbm [resolvable:$true] %s1243_s30 }
  0x1e   : > { %s1245_s4 = scalar_lea.hbm %s1244_s30, 384  ;;  %p1251_p0 = scmp.lt.s32.totalorder %s1244_s30, %s1671_s0 }
  0x1f   : > { %p1246_p2 = scmp.ne.s32.totalorder %s1244_s30, %s1245_s4  ;;  %p1252_p5 = scmp.lt.s32.totalorder %s1250_s8, %s1245_s4 }
  0x21   : > { %p1248_p12 = pnand %p1247_p10, %p1246_p2  ;;  %p1253_p7 = por %p1252_p5, %p1251_p0 }
  0x23   : > { %p1249_p13 = pneg %p1248_p12 }
  0x25   : > { %p1254_p11 = pnand %p1253_p7, %p1249_p13 }
  0x27   : > { %1257 = shalt.err (!%p1254_p11)
}
  0x28   : > { %s1349_s11 = smov 256   ;;  %s1350_s17 = smov 16  }
  0x29   : > { %1132 = dma.hbm_to_vmem [thread:$0]  (!%p1449_p9), %s170_s28, 6144, %s172_s27, %s159_s29, %s1349_s11, %s1349_s11, %s1350_s17  }
  0x2a   : > { %183 = sbr.rel (%p1416_p8) target bundleno = 410 (0x19a), region = 32  ;;  %s1469_s24 = sand.u32 (!%p1416_p8), 1, %s1335_s13  }
  0x2b   : > { %s1109_s25 = smul.u32 (!%p1416_p8), 384, %s1469_s24  ;;  %s186_s26 = scalar_lea.sflag (!%p1416_p8), [#allocation3], %s1469_s24 }
  0x2d   : > { %s1475_s30 = scalar_lea.vmem (!%p1416_p8), [#allocation2], %s1109_s25 }
  0x2f   : > { %1318 = dma.done.wait (%p1403_p4), %s186_s26, 6144  }
  0x30   : > { %1320 = vsyncadd (%p1403_p4), %s186_s26, 4294961152 }
  0x31   : > { %1322 = dma.done.wait (%p41_p1), [#allocation6], 4128  }
  0x32   : > { %1324 = vsyncadd (%p41_p1), [#allocation6], 4294963168  ;;  %v996_v0 = vld [vmem:[#allocation5 + $0x70] sm:$0xf]  ;;  %v1087_v1 = vld [vmem:[#allocation5 + $0x74] sm:$0xf0] }
  0x33   : > { %v1060_v2 = vld [vmem:[#allocation5 + $0xf0] sm:$0xf]  ;;  %v997_v3 = vor.u32 %v1087_v1, %v996_v0  ;;  %v1103_v4 = vld [vmem:[#allocation5 + $0xf4] sm:$0xf0]  ;;  %v1086_v5 = vld [vmem:[#allocation5 + $0x74] sm:$0xf] }
  0x34   : > { %v998_v6 = vld [vmem:[#allocation5 + $0x78] sm:$0xf0]  ;;  %v1061_v7 = vor.u32 %v1103_v4, %v1060_v2  ;;  %v1102_v9 = vld [vmem:[#allocation5 + $0xf4] sm:$0xf]  ;;  %v988_v11 = vld [vmem:[#allocation5 + $0x60] sm:$0xf] }
  0x35   : > { %v1001_v8 = vor.u32 %v1086_v5, %v998_v6  ;;  %v1062_v10 = vld [vmem:[#allocation5 + $0xf8] sm:$0xf0]  ;;  %495 = vmatpush.bf16.msra.mxu0 %v997_v3  ;;  %v1085_v13 = vld [vmem:[#allocation5 + $0x64] sm:$0xf0]  ;;  %v1052_v14 = vld [vmem:[#allocation5 + $0xe0] sm:$0xf] }
  0x36   : > { %v1065_v12 = vor.u32 %v1102_v9, %v1062_v10  ;;  %v1101_v15 = vld [vmem:[#allocation5 + $0xe4] sm:$0xf0]  ;;  %564 = vmatpush.bf16.msra.mxu1 %v1061_v7  ;;  %v989_v16 = vor.u32 %v1085_v13, %v988_v11  ;;  %v1084_v18 = vld [vmem:[#allocation5 + $0x64] sm:$0xf]  ;;  %v990_v19 = vld [vmem:[#allocation5 + $0x68] sm:$0xf0] }
  0x37   : > { %633 = vmatpush.bf16.msra.mxu2 %v1001_v8  ;;  %v1053_v17 = vor.u32 %v1101_v15, %v1052_v14  ;;  %v1100_v20 = vld [vmem:[#allocation5 + $0xe4] sm:$0xf]  ;;  %v993_v21 = vor.u32 %v1084_v18, %v990_v19  ;;  %v1054_v22 = vld [vmem:[#allocation5 + $0xe8] sm:$0xf0]  ;;  %v980_v23 = vld [vmem:[#allocation5 + $0x50] sm:$0xf] }
  0x38   : > { %702 = vmatpush.bf16.msra.mxu3 %v1065_v12  ;;  %v1083_v24 = vld [vmem:[#allocation5 + $0x54] sm:$0xf0]  ;;  %v1057_v25 = vor.u32 %v1100_v20, %v1054_v22  ;;  %v1044_v26 = vld [vmem:[#allocation5 + $0xd0] sm:$0xf]  ;;  %v1082_v28 = vld [vmem:[#allocation5 + $0x54] sm:$0xf] }
  0x39   : > { %v1099_v27 = vld [vmem:[#allocation5 + $0xd4] sm:$0xf0]  ;;  %496 = vmatpush.bf16.msra.mxu0 %v989_v16  ;;  %v981_v29 = vor.u32 %v1083_v24, %v980_v23  ;;  %v982_v30 = vld [vmem:[#allocation5 + $0x58] sm:$0xf0]  ;;  %v1098_v31 = vld [vmem:[#allocation5 + $0xd4] sm:$0xf] }
  0x3a   : > { %v1046_v32 = vld [vmem:[#allocation5 + $0xd8] sm:$0xf0]  ;;  %565 = vmatpush.bf16.msra.mxu1 %v1053_v17  ;;  %v1045_v33 = vor.u32 %v1099_v27, %v1044_v26  ;;  %v985_v34 = vor.u32 %v1082_v28, %v982_v30  ;;  %v972_v35 = vld [vmem:[#allocation5 + $0x40] sm:$0xf]  ;;  %v1081_v36 = vld [vmem:[#allocation5 + $0x44] sm:$0xf0] }
  0x3b   : > { %634 = vmatpush.bf16.msra.mxu2 %v993_v21  ;;  %v1036_v37 = vld [vmem:[#allocation5 + $0xc0] sm:$0xf]  ;;  %v1049_v38 = vor.u32 %v1098_v31, %v1046_v32  ;;  %v1097_v39 = vld [vmem:[#allocation5 + $0xc4] sm:$0xf0]  ;;  %v1080_v40 = vld [vmem:[#allocation5 + $0x44] sm:$0xf]  ;;  %v973_v44 = vor.u32 %v1081_v36, %v972_v35 }
  0x3c   : > { %703 = vmatpush.bf16.msra.mxu3 %v1057_v25  ;;  %v974_v41 = vld [vmem:[#allocation5 + $0x48] sm:$0xf0]  ;;  %v1096_v42 = vld [vmem:[#allocation5 + $0xc4] sm:$0xf]  ;;  %v1037_v45 = vor.u32 %v1097_v39, %v1036_v37  ;;  %v964_v47 = vld [vmem:[#allocation5 + $0x30] sm:$0xf] }
  0x3d   : > { %v1038_v43 = vld [vmem:[#allocation5 + $0xc8] sm:$0xf0]  ;;  %497 = vmatpush.bf16.msra.mxu0 %v981_v29  ;;  %v977_v46 = vor.u32 %v1080_v40, %v974_v41  ;;  %v1079_v48 = vld [vmem:[#allocation5 + $0x34] sm:$0xf0]  ;;  %v1028_v49 = vld [vmem:[#allocation5 + $0xb0] sm:$0xf] }
  0x3e   : > { %566 = vmatpush.bf16.msra.mxu1 %v1045_v33  ;;  %v1041_v50 = vor.u32 %v1096_v42, %v1038_v43  ;;  %v1095_v51 = vld [vmem:[#allocation5 + $0xb4] sm:$0xf0]  ;;  %v1078_v52 = vld [vmem:[#allocation5 + $0x34] sm:$0xf]  ;;  %v966_v53 = vld [vmem:[#allocation5 + $0x38] sm:$0xf0]  ;;  %v965_v56 = vor.u32 %v1079_v48, %v964_v47 }
  0x3f   : > { %635 = vmatpush.bf16.msra.mxu2 %v985_v34  ;;  %v1094_v54 = vld [vmem:[#allocation5 + $0xb4] sm:$0xf]  ;;  %v1030_v55 = vld [vmem:[#allocation5 + $0xb8] sm:$0xf0]  ;;  %v1029_v57 = vor.u32 %v1095_v51, %v1028_v49  ;;  %v969_v58 = vor.u32 %v1078_v52, %v966_v53  ;;  %v956_v59 = vld [vmem:[#allocation5 + $0x20] sm:$0xf] }
  0x40   : > { %704 = vmatpush.bf16.msra.mxu3 %v1049_v38  ;;  %v1077_v60 = vld [vmem:[#allocation5 + $0x24] sm:$0xf0]  ;;  %v1020_v61 = vld [vmem:[#allocation5 + $0xa0] sm:$0xf]  ;;  %v1033_v62 = vor.u32 %v1094_v54, %v1030_v55  ;;  %v1076_v0 = vld [vmem:[#allocation5 + $0x24] sm:$0xf] }
  0x41   : > { %498 = vmatpush.bf16.msra.mxu0 %v973_v44  ;;  %v1093_v63 = vld [vmem:[#allocation5 + $0xa4] sm:$0xf0]  ;;  %v958_v1 = vld [vmem:[#allocation5 + $0x28] sm:$0xf0]  ;;  %v1092_v2 = vld [vmem:[#allocation5 + $0xa4] sm:$0xf]  ;;  %v957_v4 = vor.u32 %v1077_v60, %v956_v59 }
  0x42   : > { %567 = vmatpush.bf16.msra.mxu1 %v1037_v45  ;;  %v1022_v3 = vld [vmem:[#allocation5 + $0xa8] sm:$0xf0]  ;;  %v1021_v5 = vor.u32 %v1093_v63, %v1020_v61  ;;  %v961_v6 = vor.u32 %v1076_v0, %v958_v1  ;;  %v948_v7 = vld [vmem:[#allocation5 + $0x10] sm:$0xf]  ;;  %v1075_v8 = vld [vmem:[#allocation5 + $0x14] sm:$0xf0] }
  0x43   : > { %636 = vmatpush.bf16.msra.mxu2 %v977_v46  ;;  %v1012_v9 = vld [vmem:[#allocation5 + $0x90] sm:$0xf]  ;;  %v1025_v10 = vor.u32 %v1092_v2, %v1022_v3  ;;  %v1091_v11 = vld [vmem:[#allocation5 + $0x94] sm:$0xf0]  ;;  %v1074_v12 = vld [vmem:[#allocation5 + $0x14] sm:$0xf]  ;;  %v949_v16 = vor.u32 %v1075_v8, %v948_v7 }
  0x44   : > { %705 = vmatpush.bf16.msra.mxu3 %v1041_v50  ;;  %v950_v13 = vld [vmem:[#allocation5 + $0x18] sm:$0xf0]  ;;  %v1090_v14 = vld [vmem:[#allocation5 + $0x94] sm:$0xf]  ;;  %v1013_v17 = vor.u32 %v1091_v11, %v1012_v9  ;;  %v940_v19 = vld [vmem:[#allocation5] sm:$0xf] }
  0x45   : > { %499 = vmatpush.bf16.msra.mxu0 %v965_v56  ;;  %v1014_v15 = vld [vmem:[#allocation5 + $0x98] sm:$0xf0]  ;;  %v953_v18 = vor.u32 %v1074_v12, %v950_v13  ;;  %v1073_v20 = vld [vmem:[#allocation5 + $0x4] sm:$0xf0]  ;;  %v1004_v21 = vld [vmem:[#allocation5 + $0x80] sm:$0xf] }
  0x46   : > { %568 = vmatpush.bf16.msra.mxu1 %v1029_v57  ;;  %v1017_v22 = vor.u32 %v1090_v14, %v1014_v15  ;;  %v1089_v23 = vld [vmem:[#allocation5 + $0x84] sm:$0xf0]  ;;  %v1072_v24 = vld [vmem:[#allocation5 + $0x4] sm:$0xf]  ;;  %v942_v25 = vld [vmem:[#allocation5 + $0x8] sm:$0xf0]  ;;  %v941_v28 = vor.u32 %v1073_v20, %v940_v19 }
  0x47   : > { %637 = vmatpush.bf16.msra.mxu2 %v969_v58  ;;  %v1088_v26 = vld [vmem:[#allocation5 + $0x84] sm:$0xf]  ;;  %v1006_v27 = vld [vmem:[#allocation5 + $0x88] sm:$0xf0]  ;;  %v227_v30 = vld [vmem:[%s1475_s30 + $0x10] sm:$0xff]  ;;  %v1005_v31 = vor.u32 %v1089_v23, %v1004_v21  ;;  %v945_v32 = vor.u32 %v1072_v24, %v942_v25  ;;  %s1528_s18 = scalar_lea.vmem [#allocation8], %s1109_s25 }
  0x48   : > { %706 = vmatpush.bf16.msra.mxu3 %v1033_v62  ;;  %v225_v29 = vld [vmem:[%s1475_s30] sm:$0xff]  ;;  %v226_v33 = vld [vmem:[%s1475_s30 + $0x8] sm:$0xff]  ;;  %v228_v34 = vld [vmem:[%s1475_s30 + $0x18] sm:$0xff]  ;;  %v1009_v35 = vor.u32 %v1088_v26, %v1006_v27  ;;  %s1107_s23 = smul.u32 384, %s1394_s16  ;;  %s833_s29 = sshll.u32 %s1528_s18, 4  ;;  %s834_s29 = int_to_ptr.vmem [resolvable:$true] %s833_s29 }
  0x49   : > { %500 = vmatpush.bf16.msra.mxu0 %v957_v4  ;;  %v273_v36 = vpack.c.bf16 %v227_v30, %v225_v29  ;;  %v274_v37 = vpack.c.bf16 %v228_v34, %v226_v33  ;;  %v229_v38 = vld [vmem:[%s1475_s30 + $0x20] sm:$0xff]  ;;  %v231_v39 = vld [vmem:[%s1475_s30 + $0x30] sm:$0xff]  ;;  %v230_v40 = vld [vmem:[%s1475_s30 + $0x28] sm:$0xff]  ;;  %s820_s4 = scalar_lea.sflag [#allocation4], %s1469_s24  ;;  %s1293_s20 = scalar_lea.hbm %s1674_s3, 768 }
  0x4a   : > { %569 = vmatpush.bf16.msra.mxu1 %v1021_v5  ;;  %v232_v41 = vld [vmem:[%s1475_s30 + $0x38] sm:$0xff]  ;;  %v275_v42 = vpack.c.bf16 %v231_v39, %v229_v38  ;;  %v233_v44 = vld [vmem:[%s1475_s30 + $0x40] sm:$0xff]  ;;  %v235_v45 = vld [vmem:[%s1475_s30 + $0x50] sm:$0xff]  ;;  %s832_s28 = scalar_lea.hbm %s1674_s3, %s1107_s23 }
  0x4b   : > { %638 = vmatpush.bf16.msra.mxu2 %v961_v6  ;;  %v276_v43 = vpack.c.bf16 %v232_v41, %v230_v40  ;;  %v234_v46 = vld [vmem:[%s1475_s30 + $0x48] sm:$0xff]  ;;  %v236_v47 = vld [vmem:[%s1475_s30 + $0x58] sm:$0xff]  ;;  %v277_v48 = vpack.c.bf16 %v235_v45, %v233_v44  ;;  %v237_v50 = vld [vmem:[%s1475_s30 + $0x60] sm:$0xff]  ;;  %s835_s16 = sshll.u32 %s832_s28, 4  ;;  %s836_s16 = int_to_ptr.hbm [resolvable:$true] %s835_s16 }
  0x4c   : > { %707 = vmatpush.bf16.msra.mxu3 %v1025_v10  ;;  %v278_v49 = vpack.c.bf16 %v236_v47, %v234_v46  ;;  %v239_v51 = vld [vmem:[%s1475_s30 + $0x70] sm:$0xff]  ;;  %v238_v52 = vld [vmem:[%s1475_s30 + $0x68] sm:$0xff]  ;;  %v240_v53 = vld [vmem:[%s1475_s30 + $0x78] sm:$0xff]  ;;  %s1287_s5 = sshra.s32 %s836_s16, 4  ;;  %s1288_s5 = int_to_ptr.hbm [resolvable:$true] %s1287_s5 }
  0x4d   : > { %501 = vmatpush.bf16.msra.mxu0 %v949_v16  ;;  %v279_v54 = vpack.c.bf16 %v239_v51, %v237_v50  ;;  %v280_v55 = vpack.c.bf16 %v240_v53, %v238_v52  ;;  %v241_v56 = vld [vmem:[%s1475_s30 + $0x80] sm:$0xff]  ;;  %v243_v57 = vld [vmem:[%s1475_s30 + $0x90] sm:$0xff]  ;;  %v242_v58 = vld [vmem:[%s1475_s30 + $0x88] sm:$0xff]  ;;  %s1289_s7 = scalar_lea.hbm %s1288_s5, 384  ;;  %p1294_p11 = scmp.lt.s32.totalorder %s1288_s5, %s1674_s3 }
  0x4e   : > { %570 = vmatpush.bf16.msra.mxu1 %v1013_v17  ;;  %v244_v59 = vld [vmem:[%s1475_s30 + $0x98] sm:$0xff]  ;;  %v281_v60 = vpack.c.bf16 %v243_v57, %v241_v56  ;;  %v245_v62 = vld [vmem:[%s1475_s30 + $0xa0] sm:$0xff]  ;;  %v247_v63 = vld [vmem:[%s1475_s30 + $0xb0] sm:$0xff]  ;;  %p1290_p1 = scmp.ne.s32.totalorder %s1288_s5, %s1289_s7  ;;  %p1295_p9 = scmp.lt.s32.totalorder %s1293_s20, %s1289_s7 }
  0x4f   : > { %639 = vmatpush.bf16.msra.mxu2 %v953_v18  ;;  %v282_v61 = vpack.c.bf16 %v244_v59, %v242_v58  ;;  %v246_v0 = vld [vmem:[%s1475_s30 + $0xa8] sm:$0xff]  ;;  %v248_v1 = vld [vmem:[%s1475_s30 + $0xb8] sm:$0xff]  ;;  %v283_v2 = vpack.c.bf16 %v247_v63, %v245_v62  ;;  %v249_v4 = vld [vmem:[%s1475_s30 + $0xc0] sm:$0xff] }
  0x50   : > { %708 = vmatpush.bf16.msra.mxu3 %v1017_v22  ;;  %v284_v3 = vpack.c.bf16 %v248_v1, %v246_v0  ;;  %v251_v5 = vld [vmem:[%s1475_s30 + $0xd0] sm:$0xff]  ;;  %v250_v6 = vld [vmem:[%s1475_s30 + $0xc8] sm:$0xff]  ;;  %v252_v7 = vld [vmem:[%s1475_s30 + $0xd8] sm:$0xff]  ;;  %p1291_p4 = pnand %p1290_p1, %p1439_p3  ;;  %p1296_p2 = por %p1295_p9, %p1294_p11 }
  0x51   : > { %502 = vmatpush.bf16.msra.mxu0 %v941_v28  ;;  %v285_v8 = vpack.c.bf16 %v251_v5, %v249_v4  ;;  %v286_v9 = vpack.c.bf16 %v252_v7, %v250_v6  ;;  %v253_v10 = vld [vmem:[%s1475_s30 + $0xe0] sm:$0xff]  ;;  %v255_v11 = vld [vmem:[%s1475_s30 + $0xf0] sm:$0xff]  ;;  %v254_v12 = vld [vmem:[%s1475_s30 + $0xe8] sm:$0xff] }
  0x52   : > { %571 = vmatpush.bf16.msra.mxu1 %v1005_v31  ;;  %v256_v13 = vld [vmem:[%s1475_s30 + $0xf8] sm:$0xff]  ;;  %v287_v14 = vpack.c.bf16 %v255_v11, %v253_v10  ;;  %v329_v16 = vld [vmem:[#allocation7] sm:$0x3]  ;;  %v259_v18 = vld [vmem:[%s1475_s30 + $0x110] sm:$0xff]  ;;  %p1292_p8 = pneg %p1291_p4 }
  0x53   : > { %640 = vmatpush.bf16.msra.mxu2 %v945_v32  ;;  %v288_v15 = vpack.c.bf16 %v256_v13, %v254_v12  ;;  %v257_v17 = vld [vmem:[%s1475_s30 + $0x100] sm:$0xff]  ;;  %v1519_v19 = vperm.slane %v329_v16, 0  ;;  %v258_v20 = vld [vmem:[%s1475_s30 + $0x108] sm:$0xff]  ;;  %v260_v21 = vld [vmem:[%s1475_s30 + $0x118] sm:$0xff]  ;;  %v1524_v28 = vperm.slane %v329_v16, 1 }
  0x54   : > { %709 = vmatpush.bf16.msra.mxu3 %v1009_v35  ;;  %503 = vmatmul.bf16.vlgmr.msra.gmra.mxu0 %v273_v36  ;;  %v289_v22 = vpack.c.bf16 %v259_v18, %v257_v17  ;;  %v290_v24 = vpack.c.bf16 %v260_v21, %v258_v20  ;;  %v263_v38 = vld [vmem:[%s1475_s30 + $0x130] sm:$0xff]  ;;  %v262_v39 = vld [vmem:[%s1475_s30 + $0x128] sm:$0xff]  ;;  %v264_v40 = vld [vmem:[%s1475_s30 + $0x138] sm:$0xff]  ;;  %p1297_p10 = pnand %p1296_p2, %p1292_p8 }
  0x55   : > { %572 = vmatmul.bf16.vlgmr.msra.gmra.mxu1 %v274_v37  ;;  %v292_v46 = vpack.c.bf16 %v264_v40, %v262_v39  ;;  %v265_v59 = vld [vmem:[%s1475_s30 + $0x140] sm:$0xff]  ;;  %v268_v62 = vld [vmem:[%s1475_s30 + $0x158] sm:$0xff]  ;;  %v271_v18 = vld [vmem:[%s1475_s30 + $0x170] sm:$0xff] }
  0x56   : > { %641 = vmatmul.bf16.vlgmr.msra.gmra.mxu2 %v273_v36  ;;  %v269_v17 = vld [vmem:[%s1475_s30 + $0x160] sm:$0xff]  ;;  %v270_v20 = vld [vmem:[%s1475_s30 + $0x168] sm:$0xff]  ;;  %v272_v21 = vld [vmem:[%s1475_s30 + $0x178] sm:$0xff] }
  0x57   : > { %710 = vmatmul.bf16.vlgmr.msra.gmra.mxu3 %v274_v37  ;;  %v261_v37 = vld [vmem:[%s1475_s30 + $0x120] sm:$0xff] }
  0x64   : > { %508 = vmatmul.bf16.gmra.mxu0 %v275_v42 }
  0x65   : > { %577 = vmatmul.bf16.gmra.mxu1 %v276_v43 }
  0x66   : > { %646 = vmatmul.bf16.gmra.mxu2 %v275_v42  ;;  %v291_v42 = vpack.c.bf16 %v263_v38, %v261_v37 }
  0x67   : > { %715 = vmatmul.bf16.gmra.mxu3 %v276_v43 }
  0x74   : > { %513 = vmatmul.bf16.gmra.mxu0 %v277_v48 }
  0x75   : > { %582 = vmatmul.bf16.gmra.mxu1 %v278_v49 }
  0x76   : > { %651 = vmatmul.bf16.gmra.mxu2 %v277_v48 }
  0x77   : > { %720 = vmatmul.bf16.gmra.mxu3 %v278_v49 }
  0x84   : > { %518 = vmatmul.bf16.gmra.mxu0 %v279_v54 }
  0x85   : > { %587 = vmatmul.bf16.gmra.mxu1 %v280_v55 }
  0x86   : > { %656 = vmatmul.bf16.gmra.mxu2 %v279_v54 }
  0x87   : > { %725 = vmatmul.bf16.gmra.mxu3 %v280_v55 }
  0x94   : > { %523 = vmatmul.bf16.gmra.mxu0 %v281_v60 }
  0x95   : > { %592 = vmatmul.bf16.gmra.mxu1 %v282_v61 }
  0x96   : > { %661 = vmatmul.bf16.gmra.mxu2 %v281_v60  ;;  %v267_v60 = vld [vmem:[%s1475_s30 + $0x150] sm:$0xff] }
  0x97   : > { %730 = vmatmul.bf16.gmra.mxu3 %v282_v61  ;;  %v266_v61 = vld [vmem:[%s1475_s30 + $0x148] sm:$0xff]  ;;  %v293_v0 = vpack.c.bf16 %v267_v60, %v265_v59 }
  0x98   : > { %v294_v4 = vpack.c.bf16 %v268_v62, %v266_v61 }
  0xa4   : > { %528 = vmatmul.bf16.gmra.mxu0 %v283_v2 }
  0xa5   : > { %597 = vmatmul.bf16.gmra.mxu1 %v284_v3 }
  0xa6   : > { %666 = vmatmul.bf16.gmra.mxu2 %v283_v2 }
  0xa7   : > { %735 = vmatmul.bf16.gmra.mxu3 %v284_v3 }
  0xb4   : > { %533 = vmatmul.bf16.gmra.mxu0 %v285_v8 }
  0xb5   : > { %602 = vmatmul.bf16.gmra.mxu1 %v286_v9 }
  0xb6   : > { %671 = vmatmul.bf16.gmra.mxu2 %v285_v8 }
  0xb7   : > { %740 = vmatmul.bf16.gmra.mxu3 %v286_v9 }
  0xc4   : > { %538 = vmatmul.bf16.gmra.mxu0 %v287_v14 }
  0xc5   : > { %607 = vmatmul.bf16.gmra.mxu1 %v288_v15 }
  0xc6   : > { %676 = vmatmul.bf16.gmra.mxu2 %v287_v14 }
  0xc7   : > { %745 = vmatmul.bf16.gmra.mxu3 %v288_v15 }
  0xd1   : > { %v504_v23 = vpop.f32.mrf.mxu0 }
  0xd2   : > { %v505_v25 = vadd.f32 %v504_v23, %v1519_v19  ;;  %v573_v26 = vpop.f32.mrf.mxu1  ;;  %v295_v23 = vpack.c.bf16 %v271_v18, %v269_v17 }
  0xd4   : > { %v574_v27 = vadd.f32 %v573_v26, %v505_v25  ;;  %543 = vmatmul.bf16.gmra.mxu0 %v289_v22 }
  0xd5   : > { %612 = vmatmul.bf16.gmra.mxu1 %v290_v24 }
  0xd6   : > { %681 = vmatmul.bf16.gmra.mxu2 %v289_v22  ;;  %771 = vst [vmem:[%s1528_s18] sm:$0xff] %v574_v27  ;;  %v296_v27 = vpack.c.bf16 %v272_v21, %v270_v20 }
  0xd7   : > { %750 = vmatmul.bf16.gmra.mxu3 %v290_v24 }
  0xd9   : > { %v642_v29 = vpop.f32.mrf.mxu2  ;;  %v506_v32 = vpop.f32.mrf.mxu0 }
  0xda   : > { %v643_v30 = vadd.f32 %v642_v29, %v1524_v28  ;;  %v711_v31 = vpop.f32.mrf.mxu3  ;;  %v507_v33 = vadd.f32 %v506_v32, %v1519_v19  ;;  %v575_v34 = vpop.f32.mrf.mxu1 }
  0xdc   : > { %v712_v35 = vadd.f32 %v711_v31, %v643_v30  ;;  %v576_v36 = vadd.f32 %v575_v34, %v507_v33 }
  0xde   : > { %772 = vst [vmem:[%s1528_s18 + $0x8] sm:$0xff] %v712_v35 }
  0xdf   : > { %773 = vst [vmem:[%s1528_s18 + $0x10] sm:$0xff] %v576_v36 }
  0xe1   : > { %v644_v41 = vpop.f32.mrf.mxu2  ;;  %v509_v45 = vpop.f32.mrf.mxu0 }
  0xe2   : > { %v645_v43 = vadd.f32 %v644_v41, %v1524_v28  ;;  %v713_v44 = vpop.f32.mrf.mxu3  ;;  %v510_v47 = vadd.f32 %v509_v45, %v1519_v19  ;;  %v578_v48 = vpop.f32.mrf.mxu1 }
  0xe4   : > { %v714_v49 = vadd.f32 %v713_v44, %v645_v43  ;;  %v579_v50 = vadd.f32 %v578_v48, %v510_v47  ;;  %548 = vmatmul.bf16.gmra.mxu0 %v291_v42 }
  0xe5   : > { %617 = vmatmul.bf16.gmra.mxu1 %v292_v46 }
  0xe6   : > { %774 = vst [vmem:[%s1528_s18 + $0x18] sm:$0xff] %v714_v49  ;;  %686 = vmatmul.bf16.gmra.mxu2 %v291_v42 }
  0xe7   : > { %775 = vst [vmem:[%s1528_s18 + $0x20] sm:$0xff] %v579_v50  ;;  %755 = vmatmul.bf16.gmra.mxu3 %v292_v46 }
  0xe9   : > { %v647_v51 = vpop.f32.mrf.mxu2  ;;  %v511_v54 = vpop.f32.mrf.mxu0 }
  0xea   : > { %v648_v52 = vadd.f32 %v647_v51, %v1524_v28  ;;  %v716_v53 = vpop.f32.mrf.mxu3  ;;  %v512_v55 = vadd.f32 %v511_v54, %v1519_v19  ;;  %v580_v56 = vpop.f32.mrf.mxu1 }
  0xec   : > { %v717_v57 = vadd.f32 %v716_v53, %v648_v52  ;;  %v581_v58 = vadd.f32 %v580_v56, %v512_v55 }
  0xee   : > { %776 = vst [vmem:[%s1528_s18 + $0x28] sm:$0xff] %v717_v57 }
  0xef   : > { %777 = vst [vmem:[%s1528_s18 + $0x30] sm:$0xff] %v581_v58 }
  0xf1   : > { %v649_v63 = vpop.f32.mrf.mxu2  ;;  %v514_v3 = vpop.f32.mrf.mxu0 }
  0xf2   : > { %v650_v1 = vadd.f32 %v649_v63, %v1524_v28  ;;  %v718_v2 = vpop.f32.mrf.mxu3  ;;  %v515_v5 = vadd.f32 %v514_v3, %v1519_v19  ;;  %v583_v6 = vpop.f32.mrf.mxu1 }
  0xf4   : > { %v719_v7 = vadd.f32 %v718_v2, %v650_v1  ;;  %v584_v8 = vadd.f32 %v583_v6, %v515_v5  ;;  %553 = vmatmul.bf16.gmra.mxu0 %v293_v0 }
  0xf5   : > { %622 = vmatmul.bf16.gmra.mxu1 %v294_v4 }
  0xf6   : > { %778 = vst [vmem:[%s1528_s18 + $0x38] sm:$0xff] %v719_v7  ;;  %691 = vmatmul.bf16.gmra.mxu2 %v293_v0 }
  0xf7   : > { %779 = vst [vmem:[%s1528_s18 + $0x40] sm:$0xff] %v584_v8  ;;  %760 = vmatmul.bf16.gmra.mxu3 %v294_v4 }
  0xf9   : > { %v652_v9 = vpop.f32.mrf.mxu2  ;;  %v516_v12 = vpop.f32.mrf.mxu0 }
  0xfa   : > { %v653_v10 = vadd.f32 %v652_v9, %v1524_v28  ;;  %v721_v11 = vpop.f32.mrf.mxu3  ;;  %v517_v13 = vadd.f32 %v516_v12, %v1519_v19  ;;  %v585_v14 = vpop.f32.mrf.mxu1 }
  0xfc   : > { %v722_v15 = vadd.f32 %v721_v11, %v653_v10  ;;  %v586_v16 = vadd.f32 %v585_v14, %v517_v13 }
  0xfe   : > { %780 = vst [vmem:[%s1528_s18 + $0x48] sm:$0xff] %v722_v15 }
  0xff   : > { %781 = vst [vmem:[%s1528_s18 + $0x50] sm:$0xff] %v586_v16 }
 0x101   : > { %v654_v22 = vpop.f32.mrf.mxu2  ;;  %v519_v26 = vpop.f32.mrf.mxu0 }
 0x102   : > { %v655_v24 = vadd.f32 %v654_v22, %v1524_v28  ;;  %v723_v25 = vpop.f32.mrf.mxu3  ;;  %v520_v29 = vadd.f32 %v519_v26, %v1519_v19  ;;  %v588_v30 = vpop.f32.mrf.mxu1 }
 0x104   : > { %v724_v31 = vadd.f32 %v723_v25, %v655_v24  ;;  %v589_v32 = vadd.f32 %v588_v30, %v520_v29  ;;  %558 = vmatmul.bf16.gmra.mxu0 %v295_v23 }
 0x105   : > { %627 = vmatmul.bf16.gmra.mxu1 %v296_v27 }
 0x106   : > { %782 = vst [vmem:[%s1528_s18 + $0x58] sm:$0xff] %v724_v31  ;;  %696 = vmatmul.bf16.gmra.mxu2 %v295_v23 }
 0x107   : > { %783 = vst [vmem:[%s1528_s18 + $0x60] sm:$0xff] %v589_v32  ;;  %765 = vmatmul.bf16.gmra.mxu3 %v296_v27 }
 0x109   : > { %v657_v33 = vpop.f32.mrf.mxu2  ;;  %v521_v36 = vpop.f32.mrf.mxu0 }
 0x10a   : > { %v658_v34 = vadd.f32 %v657_v33, %v1524_v28  ;;  %v726_v35 = vpop.f32.mrf.mxu3  ;;  %v522_v37 = vadd.f32 %v521_v36, %v1519_v19  ;;  %v590_v38 = vpop.f32.mrf.mxu1 }
 0x10c   : > { %v727_v39 = vadd.f32 %v726_v35, %v658_v34  ;;  %v591_v40 = vadd.f32 %v590_v38, %v522_v37 }
 0x10e   : > { %784 = vst [vmem:[%s1528_s18 + $0x68] sm:$0xff] %v727_v39 }
 0x10f   : > { %785 = vst [vmem:[%s1528_s18 + $0x70] sm:$0xff] %v591_v40 }
 0x111   : > { %v659_v41 = vpop.f32.mrf.mxu2  ;;  %v524_v44 = vpop.f32.mrf.mxu0 }
 0x112   : > { %v660_v42 = vadd.f32 %v659_v41, %v1524_v28  ;;  %v728_v43 = vpop.f32.mrf.mxu3  ;;  %v525_v45 = vadd.f32 %v524_v44, %v1519_v19  ;;  %v593_v46 = vpop.f32.mrf.mxu1 }
 0x114   : > { %v729_v47 = vadd.f32 %v728_v43, %v660_v42  ;;  %v594_v48 = vadd.f32 %v593_v46, %v525_v45 }
 0x116   : > { %786 = vst [vmem:[%s1528_s18 + $0x78] sm:$0xff] %v729_v47 }
 0x117   : > { %787 = vst [vmem:[%s1528_s18 + $0x80] sm:$0xff] %v594_v48 }
 0x119   : > { %v662_v49 = vpop.f32.mrf.mxu2  ;;  %v526_v52 = vpop.f32.mrf.mxu0 }
 0x11a   : > { %v663_v50 = vadd.f32 %v662_v49, %v1524_v28  ;;  %v731_v51 = vpop.f32.mrf.mxu3  ;;  %v527_v53 = vadd.f32 %v526_v52, %v1519_v19  ;;  %v595_v54 = vpop.f32.mrf.mxu1 }
 0x11c   : > { %v732_v55 = vadd.f32 %v731_v51, %v663_v50  ;;  %v596_v56 = vadd.f32 %v595_v54, %v527_v53 }
 0x11e   : > { %788 = vst [vmem:[%s1528_s18 + $0x88] sm:$0xff] %v732_v55 }
 0x11f   : > { %789 = vst [vmem:[%s1528_s18 + $0x90] sm:$0xff] %v596_v56 }
 0x121   : > { %v664_v57 = vpop.f32.mrf.mxu2  ;;  %v529_v60 = vpop.f32.mrf.mxu0 }
 0x122   : > { %v665_v58 = vadd.f32 %v664_v57, %v1524_v28  ;;  %v733_v59 = vpop.f32.mrf.mxu3  ;;  %v530_v61 = vadd.f32 %v529_v60, %v1519_v19  ;;  %v598_v62 = vpop.f32.mrf.mxu1 }
 0x124   : > { %v734_v63 = vadd.f32 %v733_v59, %v665_v58  ;;  %v599_v0 = vadd.f32 %v598_v62, %v530_v61 }
 0x126   : > { %790 = vst [vmem:[%s1528_s18 + $0x98] sm:$0xff] %v734_v63 }
 0x127   : > { %791 = vst [vmem:[%s1528_s18 + $0xa0] sm:$0xff] %v599_v0 }
 0x129   : > { %v667_v1 = vpop.f32.mrf.mxu2  ;;  %v531_v4 = vpop.f32.mrf.mxu0 }
 0x12a   : > { %v668_v2 = vadd.f32 %v667_v1, %v1524_v28  ;;  %v736_v3 = vpop.f32.mrf.mxu3  ;;  %v532_v5 = vadd.f32 %v531_v4, %v1519_v19  ;;  %v600_v6 = vpop.f32.mrf.mxu1 }
 0x12c   : > { %v737_v7 = vadd.f32 %v736_v3, %v668_v2  ;;  %v601_v8 = vadd.f32 %v600_v6, %v532_v5 }
 0x12e   : > { %792 = vst [vmem:[%s1528_s18 + $0xa8] sm:$0xff] %v737_v7 }
 0x12f   : > { %793 = vst [vmem:[%s1528_s18 + $0xb0] sm:$0xff] %v601_v8 }
 0x131   : > { %v669_v9 = vpop.f32.mrf.mxu2  ;;  %v534_v12 = vpop.f32.mrf.mxu0 }
 0x132   : > { %v670_v10 = vadd.f32 %v669_v9, %v1524_v28  ;;  %v738_v11 = vpop.f32.mrf.mxu3  ;;  %v535_v13 = vadd.f32 %v534_v12, %v1519_v19  ;;  %v603_v14 = vpop.f32.mrf.mxu1 }
 0x134   : > { %v739_v15 = vadd.f32 %v738_v11, %v670_v10  ;;  %v604_v16 = vadd.f32 %v603_v14, %v535_v13 }
 0x136   : > { %794 = vst [vmem:[%s1528_s18 + $0xb8] sm:$0xff] %v739_v15 }
 0x137   : > { %795 = vst [vmem:[%s1528_s18 + $0xc0] sm:$0xff] %v604_v16 }
 0x139   : > { %v672_v17 = vpop.f32.mrf.mxu2  ;;  %v536_v21 = vpop.f32.mrf.mxu0 }
 0x13a   : > { %v673_v18 = vadd.f32 %v672_v17, %v1524_v28  ;;  %v741_v20 = vpop.f32.mrf.mxu3  ;;  %v537_v22 = vadd.f32 %v536_v21, %v1519_v19  ;;  %v605_v23 = vpop.f32.mrf.mxu1 }
 0x13c   : > { %v742_v24 = vadd.f32 %v741_v20, %v673_v18  ;;  %v606_v25 = vadd.f32 %v605_v23, %v537_v22 }
 0x13e   : > { %796 = vst [vmem:[%s1528_s18 + $0xc8] sm:$0xff] %v742_v24 }
 0x13f   : > { %797 = vst [vmem:[%s1528_s18 + $0xd0] sm:$0xff] %v606_v25 }
 0x141   : > { %v674_v26 = vpop.f32.mrf.mxu2  ;;  %v539_v30 = vpop.f32.mrf.mxu0 }
 0x142   : > { %v675_v27 = vadd.f32 %v674_v26, %v1524_v28  ;;  %v743_v29 = vpop.f32.mrf.mxu3  ;;  %v540_v31 = vadd.f32 %v539_v30, %v1519_v19  ;;  %v608_v32 = vpop.f32.mrf.mxu1 }
 0x144   : > { %v744_v33 = vadd.f32 %v743_v29, %v675_v27  ;;  %v609_v34 = vadd.f32 %v608_v32, %v540_v31 }
 0x146   : > { %798 = vst [vmem:[%s1528_s18 + $0xd8] sm:$0xff] %v744_v33 }
 0x147   : > { %799 = vst [vmem:[%s1528_s18 + $0xe0] sm:$0xff] %v609_v34 }
 0x149   : > { %v677_v35 = vpop.f32.mrf.mxu2  ;;  %v541_v38 = vpop.f32.mrf.mxu0 }
 0x14a   : > { %v678_v36 = vadd.f32 %v677_v35, %v1524_v28  ;;  %v746_v37 = vpop.f32.mrf.mxu3  ;;  %v542_v39 = vadd.f32 %v541_v38, %v1519_v19  ;;  %v610_v40 = vpop.f32.mrf.mxu1 }
 0x14c   : > { %v747_v41 = vadd.f32 %v746_v37, %v678_v36  ;;  %v611_v42 = vadd.f32 %v610_v40, %v542_v39 }
 0x14e   : > { %800 = vst [vmem:[%s1528_s18 + $0xe8] sm:$0xff] %v747_v41 }
 0x14f   : > { %801 = vst [vmem:[%s1528_s18 + $0xf0] sm:$0xff] %v611_v42 }
 0x151   : > { %v679_v43 = vpop.f32.mrf.mxu2  ;;  %v544_v46 = vpop.f32.mrf.mxu0 }
 0x152   : > { %v680_v44 = vadd.f32 %v679_v43, %v1524_v28  ;;  %v748_v45 = vpop.f32.mrf.mxu3  ;;  %v545_v47 = vadd.f32 %v544_v46, %v1519_v19  ;;  %v613_v48 = vpop.f32.mrf.mxu1 }
 0x154   : > { %v749_v49 = vadd.f32 %v748_v45, %v680_v44  ;;  %v614_v50 = vadd.f32 %v613_v48, %v545_v47 }
 0x156   : > { %802 = vst [vmem:[%s1528_s18 + $0xf8] sm:$0xff] %v749_v49 }
 0x157   : > { %803 = vst [vmem:[%s1528_s18 + $0x100] sm:$0xff] %v614_v50 }
 0x159   : > { %v682_v51 = vpop.f32.mrf.mxu2  ;;  %v546_v54 = vpop.f32.mrf.mxu0 }
 0x15a   : > { %v683_v52 = vadd.f32 %v682_v51, %v1524_v28  ;;  %v751_v53 = vpop.f32.mrf.mxu3  ;;  %v547_v55 = vadd.f32 %v546_v54, %v1519_v19  ;;  %v615_v56 = vpop.f32.mrf.mxu1 }
 0x15c   : > { %v752_v57 = vadd.f32 %v751_v53, %v683_v52  ;;  %v616_v58 = vadd.f32 %v615_v56, %v547_v55 }
 0x15e   : > { %804 = vst [vmem:[%s1528_s18 + $0x108] sm:$0xff] %v752_v57 }
 0x15f   : > { %805 = vst [vmem:[%s1528_s18 + $0x110] sm:$0xff] %v616_v58 }
 0x161   : > { %v684_v59 = vpop.f32.mrf.mxu2  ;;  %v549_v62 = vpop.f32.mrf.mxu0 }
 0x162   : > { %v685_v60 = vadd.f32 %v684_v59, %v1524_v28  ;;  %v753_v61 = vpop.f32.mrf.mxu3  ;;  %v550_v63 = vadd.f32 %v549_v62, %v1519_v19  ;;  %v618_v0 = vpop.f32.mrf.mxu1 }
 0x164   : > { %v754_v1 = vadd.f32 %v753_v61, %v685_v60  ;;  %v619_v2 = vadd.f32 %v618_v0, %v550_v63 }
 0x166   : > { %806 = vst [vmem:[%s1528_s18 + $0x118] sm:$0xff] %v754_v1 }
 0x167   : > { %807 = vst [vmem:[%s1528_s18 + $0x120] sm:$0xff] %v619_v2 }
 0x169   : > { %v687_v3 = vpop.f32.mrf.mxu2  ;;  %v551_v6 = vpop.f32.mrf.mxu0 }
 0x16a   : > { %v688_v4 = vadd.f32 %v687_v3, %v1524_v28  ;;  %v756_v5 = vpop.f32.mrf.mxu3  ;;  %v552_v7 = vadd.f32 %v551_v6, %v1519_v19  ;;  %v620_v8 = vpop.f32.mrf.mxu1 }
 0x16c   : > { %v757_v9 = vadd.f32 %v756_v5, %v688_v4  ;;  %v621_v10 = vadd.f32 %v620_v8, %v552_v7 }
 0x16e   : > { %808 = vst [vmem:[%s1528_s18 + $0x128] sm:$0xff] %v757_v9 }
 0x16f   : > { %809 = vst [vmem:[%s1528_s18 + $0x130] sm:$0xff] %v621_v10 }
 0x171   : > { %v689_v11 = vpop.f32.mrf.mxu2  ;;  %v554_v14 = vpop.f32.mrf.mxu0 }
 0x172   : > { %v690_v12 = vadd.f32 %v689_v11, %v1524_v28  ;;  %v758_v13 = vpop.f32.mrf.mxu3  ;;  %v555_v15 = vadd.f32 %v554_v14, %v1519_v19  ;;  %v623_v16 = vpop.f32.mrf.mxu1 }
 0x174   : > { %v759_v17 = vadd.f32 %v758_v13, %v690_v12  ;;  %v624_v18 = vadd.f32 %v623_v16, %v555_v15 }
 0x176   : > { %810 = vst [vmem:[%s1528_s18 + $0x138] sm:$0xff] %v759_v17 }
 0x177   : > { %811 = vst [vmem:[%s1528_s18 + $0x140] sm:$0xff] %v624_v18 }
 0x179   : > { %v692_v20 = vpop.f32.mrf.mxu2  ;;  %v556_v23 = vpop.f32.mrf.mxu0 }
 0x17a   : > { %v693_v21 = vadd.f32 %v692_v20, %v1524_v28  ;;  %v761_v22 = vpop.f32.mrf.mxu3  ;;  %v557_v24 = vadd.f32 %v556_v23, %v1519_v19  ;;  %v625_v25 = vpop.f32.mrf.mxu1 }
 0x17c   : > { %v762_v26 = vadd.f32 %v761_v22, %v693_v21  ;;  %v626_v27 = vadd.f32 %v625_v25, %v557_v24 }
 0x17e   : > { %812 = vst [vmem:[%s1528_s18 + $0x148] sm:$0xff] %v762_v26 }
 0x17f   : > { %813 = vst [vmem:[%s1528_s18 + $0x150] sm:$0xff] %v626_v27 }
 0x181   : > { %v694_v29 = vpop.f32.mrf.mxu2  ;;  %v559_v32 = vpop.f32.mrf.mxu0 }
 0x182   : > { %v695_v30 = vadd.f32 %v694_v29, %v1524_v28  ;;  %v763_v31 = vpop.f32.mrf.mxu3  ;;  %v560_v33 = vadd.f32 %v559_v32, %v1519_v19  ;;  %v628_v34 = vpop.f32.mrf.mxu1 }
 0x184   : > { %v764_v35 = vadd.f32 %v763_v31, %v695_v30  ;;  %v629_v36 = vadd.f32 %v628_v34, %v560_v33 }
 0x186   : > { %814 = vst [vmem:[%s1528_s18 + $0x158] sm:$0xff] %v764_v35 }
 0x187   : > { %815 = vst [vmem:[%s1528_s18 + $0x160] sm:$0xff] %v629_v36 }
 0x189   : > { %v697_v37 = vpop.f32.mrf.mxu2  ;;  %v561_v40 = vpop.f32.mrf.mxu0 }
 0x18a   : > { %v698_v38 = vadd.f32 %v697_v37, %v1524_v28  ;;  %v766_v39 = vpop.f32.mrf.mxu3  ;;  %v562_v41 = vadd.f32 %v561_v40, %v1519_v19  ;;  %v630_v43 = vpop.f32.mrf.mxu1 }
 0x18c   : > { %v767_v42 = vadd.f32 %v766_v39, %v698_v38  ;;  %v631_v44 = vadd.f32 %v630_v43, %v562_v41 }
 0x18e   : > { %816 = vst [vmem:[%s1528_s18 + $0x168] sm:$0xff] %v767_v42 }
 0x18f   : > { %817 = vst [vmem:[%s1528_s18 + $0x170] sm:$0xff] %v631_v44 }
 0x191   : > { %v699_v45 = vpop.f32.mrf.mxu2 }
 0x192   : > { %v700_v46 = vadd.f32 %v699_v45, %v1524_v28  ;;  %v768_v47 = vpop.f32.mrf.mxu3 }
 0x194   : > { %v769_v19 = vadd.f32 %v768_v47, %v700_v46 }
 0x196   : > { %818 = vst [vmem:[%s1528_s18 + $0x178] sm:$0xff] %v769_v19 }
 0x197   : > { %1300 = shalt.err (!%p1297_p10)
}
 0x198   : > { %s1351_s24 = smov 256   ;;  %s1352_s25 = smov 16  }
 0x199   : > { %1120 = dma.vmem_to_hbm [thread:$0]  (%p1439_p3), %s834_s29, 6144, %s836_s16, %s820_s4, %s1351_s24, %s1351_s24, %s1352_s25  }
 0x19a PF: > { %s850_s26 = sand.u32 1, %s1331_s12   ;;  %p1680_p12 = scmp.ge.s32.totalorder %s1343_s15, 2 }
 0x19b   : > { %s851_s30 = scalar_lea.sflag [#allocation4], %s850_s26 }
 0x19c   : > { %p1134_p13 = pnand %p1680_p12, %p1408_p6 }
 0x19e   : > { %p1135_p0 = pneg %p1134_p13 }
 0x1a0   : > { %1326 = dma.done.wait (%p1135_p0), %s851_s30, 6144  }
 0x1a1   : > { %1328 = vsyncadd (%p1135_p0), %s851_s30, 4294961152  ;;  %p17_p5 = scmp.ge.s32.totalorder %s1429_s6, 4   ;;  %s1681_s12 = smov %s1335_s13 }
 0x1a2   : > { %s1682_s13 = smov %s1339_s14  ;;  %s1683_s14 = smov %s1445_s10 }
 0x1a3   : > { %s1684_s15 = smov %s1429_s6  ;;  %19 = sbr.rel (!%p17_p5) target bundleno = 6 (0x6), region = 85 }
 0x1a8   :  { %857 = vsyncpa [#allocation3], 1 }
 0x1a9   :  { %859 = vsyncpa [#allocation3 + $0x1], 1 }
 0x1aa   :  { %860 = vsyncpa [#allocation6], 1 }
 0x1ab   :  { %861 = vsyncpa [#allocation4], 1 }
 0x1ac   :  { %863 = vsyncpa [#allocation4 + $0x1], 1 }

</bundles_post_ra>
